<compile_context>
chip_gen: v5e
topology: v5e:2x2
jax: 0.10.0
libtpu: 0.0.40
codegen_flags: <defaults>
</compile_context>

<pallas_src>
import jax
import jax.numpy as jnp
from jax.experimental import pallas as pl
from jax.experimental.pallas import tpu as pltpu


def v_i_forward(inputs):
    """Pallas-project equivalent of V_I.forward: (G, V, E) -> V.

    Identity op: the optimal implementation is no kernel at all (zero HBM
    traffic, zero launch overhead).  Use `v_i_forward_pallas` only if a
    materialized copy of V is explicitly required.
    """
    G, V, E = inputs
    del G, E  # unused by V_I.forward
    return V


def _identity_copy_kernel(v_ref, o_ref):
    # Straight VMEM tile copy: out tile = in tile.
    o_ref[...] = v_ref[...]


def v_i_forward_pallas(inputs):
    """Lane-dense Pallas copy of V (materializes a new buffer; 2x V.nbytes HBM)."""
    G, V, E = inputs
    del G, E  # unused by V_I.forward

    orig_shape = V.shape
    orig_dtype = V.dtype
    total = V.size
    itemsize = jnp.dtype(orig_dtype).itemsize

    LANE = 128
    # Dtype-aware sublane alignment: 8 rows for 4-byte, 16 for 2-byte, 32 for
    # 1-byte dtypes (keeps (8,128)-tiled, unmasked lane-dense stores legal).
    sublane = max(8, 32 // max(1, itemsize))

    # Per-block byte budget: 3 MiB -> worst-case VMEM working set
    # (in + out, double-buffered) = 12 MiB, safe under v5e's 16 MiB scoped
    # default and far under v6e/v7x limits.
    target_block_bytes = 3 * 1024 * 1024
    # Cap row width so that `sublane` aligned rows always fit the budget;
    # this is the fix for the old round-up-to-32 block inflation bug.
    max_row_bytes = target_block_bytes // sublane

    if total % LANE == 0:
        cols = LANE
        while (total % (cols * 2) == 0) and (cols * 2 * itemsize <= max_row_bytes):
            cols *= 2
        rows = total // cols
    else:
        # Tiny/odd sizes: single full-extent block (always a legal block shape).
        rows, cols = 1, total

    v2d = V.reshape(rows, cols)

    row_bytes = cols * itemsize
    block_rows = max(1, target_block_bytes // row_bytes)
    if block_rows >= rows:
        block_rows = rows  # full extent -> legal, single grid step
    else:
        # Round DOWN to the sublane multiple (never inflates past the budget;
        # `sublane` rows are guaranteed to fit because of max_row_bytes).
        block_rows = max(sublane, (block_rows // sublane) * sublane)
        block_rows = min(block_rows, rows)

        # v7x megacore nicety: if we need multiple steps, prefer an even grid
        # length so the "parallel" axis splits evenly across both TensorCores.
        n_blocks = pl.cdiv(rows, block_rows)
        if n_blocks > 1 and n_blocks % 2 == 1:
            n_blocks += 1
            shrunk = pl.cdiv(rows, n_blocks)
            shrunk = ((shrunk + sublane - 1) // sublane) * sublane
            # Only ever shrink (keeps the byte budget intact).
            block_rows = max(sublane, min(block_rows, shrunk))

    grid = (pl.cdiv(rows, block_rows),)

    out2d = pl.pallas_call(
        _identity_copy_kernel,
        out_shape=jax.ShapeDtypeStruct((rows, cols), orig_dtype),
        grid=grid,
        in_specs=[pl.BlockSpec((block_rows, cols), lambda r: (r, 0))],
        out_specs=pl.BlockSpec((block_rows, cols), lambda r: (r, 0)),
        cost_estimate=pl.CostEstimate(
            flops=0, transcendentals=0, bytes_accessed=2 * total * itemsize
        ),
        compiler_params=pltpu.CompilerParams(
            dimension_semantics=("parallel",),
        ),
    )(v2d)

    return out2d.reshape(orig_shape)


if __name__ == "__main__":
    key = jax.random.PRNGKey(0)
    kg, kv, ke = jax.random.split(key, 3)

    # Small synthetic graph-style inputs:
    #   G: adjacency-ish tensor   [B, N, N]
    #   V: vertex features        [B, N, D]   (this is what V_I returns)
    #   E: edge features          [B, N, N, De]
    B, N, D, De = 2, 8, 32, 4
    G = jax.random.normal(kg, (B, N, N), dtype=jnp.float32)
    V = jax.random.normal(kv, (B, N, D), dtype=jnp.float32)
    E = jax.random.normal(ke, (B, N, N, De), dtype=jnp.float32)

    # Primary path: zero-cost pass-through (review's top recommendation).
    out = v_i_forward((G, V, E))
    jax.block_until_ready(out)
    assert out.shape == V.shape and out.dtype == V.dtype
    assert bool(jnp.array_equal(out, V))

    # Optional path: materialized Pallas copy (exercised for correctness).
    out_copy = v_i_forward_pallas((G, V, E))
    jax.block_until_ready(out_copy)
    assert out_copy.shape == V.shape and out_copy.dtype == V.dtype
    assert bool(jnp.array_equal(out_copy, V))

    print("KERNEL_OK")
</pallas_src>

<mosaic_0001>
module attributes {stable_mosaic.version = 11 : i64} {
  func.func @_identity_copy_kernel(%arg0: i32, %arg1: memref<1x512xf32, #tpu.memory_space<vmem>>, %arg2: memref<1x512xf32, #tpu.memory_space<vmem>>) attributes {dimension_semantics = [#tpu.dimension_semantics<parallel>], iteration_bounds = array<i64: 1>, scalar_prefetch = 0 : i64, scratch_operands = 0 : i64, tpu.core_type = #tpu.core_type<tc>, window_params = [{transform_indices = @transform_0, window_bounds = array<i64: 1, 512>}, {transform_indices = @transform_1, window_bounds = array<i64: 1, 512>}]} {
    %c0 = arith.constant 0 : index
    %c0_0 = arith.constant 0 : index
    %0 = vector.load %arg1[%c0, %c0_0] : memref<1x512xf32, #tpu.memory_space<vmem>>, vector<1x512xf32>
    %c0_1 = arith.constant 0 : index
    %c0_2 = arith.constant 0 : index
    %1 = vector.load %arg2[%c0_1, %c0_2] : memref<1x512xf32, #tpu.memory_space<vmem>>, vector<1x512xf32>
    tpu.vector_store %arg2[%c0_1, %c0_2], %0 {strides = array<i32>} : memref<1x512xf32, #tpu.memory_space<vmem>>, vector<1x512xf32>,
    return
  }
  func.func @transform_0(%arg0: i32) -> (i32, i32) {
    %c0_i32 = arith.constant 0 : i32
    %c0_i32_0 = arith.constant 0 : i32
    return %arg0, %c0_i32 : i32, i32
  }
  func.func @transform_1(%arg0: i32) -> (i32, i32) {
    %c0_i32 = arith.constant 0 : i32
    %c0_i32_0 = arith.constant 0 : i32
    return %arg0, %c0_i32 : i32, i32
  }
}

</mosaic_0001>

<bundles_post_ra>
// kernel: tpu_custom_call.1
= control target key start
LH: loop header
LB: loop body
LE: loop exit
PB: predicated region body
PF: predicated region fallthrough
CT: control target
= control target key end

     0   :  { %6 = vsyncpa [#allocation3], 0  ;;  %s118_s0 = inlined_call_operand.hbm [shape: f32[1,512], index: 0, kind: input, shape index: {}]   ;;  %s119_s1 = inlined_call_operand.hbm [shape: f32[1,512], index: 1, kind: output, shape index: {}]  }
   0x1   :  { %7 = vsyncpa [#allocation4], 0  ;;  %s13_s8 = sshll.u32 %s118_s0, 4  ;;  %s100_s9 = smov [#allocation2]   ;;  %s14_s8 = int_to_ptr.hbm [resolvable:$true] %s13_s8 }
   0x2   :  { %s15_s10 = sshll.u32 %s100_s9, 4  ;;  %s16_s10 = int_to_ptr.vmem [resolvable:$true] %s15_s10 }
   0x3   :  { %18 = dma.hbm_to_vmem [thread:$0]  %s14_s8, 64, %s16_s10, [#allocation3]  }
   0x4   :  { %96 = dma.done.wait [#allocation3], 64  }
   0x5   :  { %97 = vsyncadd [#allocation3], 4294967232  ;;  %v24_v0 = vlaneseq  ;;  %s101_s11 = smov [#allocation5]   ;;  %s36_s15 = sshll.u32 %s119_s1, 4  ;;  %v23_v1 = vld [vmem:[#allocation2] sm:$0xf]  ;;  %s37_s15 = int_to_ptr.hbm [resolvable:$true] %s36_s15 }
   0x6   :  { %s34_s12 = sshll.u32 %s101_s11, 4  ;;  %s35_s12 = int_to_ptr.vmem [resolvable:$true] %s34_s12 }
   0x7   :  { %vm26_vm0 = vcmp.lt.s32.totalorder %v24_v0, 512 }
   0x8   :  { %28 = vst.msk [vmem:[#allocation5] sm:$0xf] %vm26_vm0, %v23_v1 }
   0x9   :  { %39 = dma.vmem_to_hbm [thread:$0]  %s35_s12, 64, %s37_s15, [#allocation4]  }
   0xa   :  { %98 = dma.done.wait [#allocation4], 64  }
   0xb   :  { %99 = vsyncadd [#allocation4], 4294967232 }
   0xc   :  { %44 = vsyncpa [#allocation3], 1 }
   0xd   :  { %45 = vsyncpa [#allocation4], 1 }

</bundles_post_ra>
